<compile_context>
chip_gen: v5e
topology: v5e:2x2
jax: 0.10.0
libtpu: 0.0.40
codegen_flags: <defaults>
</compile_context>

<pallas_src>
import math
import functools

import jax
import jax.numpy as jnp
import numpy as np
from jax import lax
from jax.experimental import pallas as pl
from jax.experimental.pallas import tpu as pltpu


def _pick_tile(n, target, multiple=16):
    """Largest tile <= target that divides n and is a multiple of `multiple`.

    All matmul inputs here are bf16, whose minimum sublane tile is 16 (f32
    needs 8), so 16 is used everywhere.  Falls back to the full dim.
    """
    if n <= target:
        return n
    start = target - (target % multiple)
    for t in range(start, multiple - 1, -multiple):
        if n % t == 0:
            return t
    return n


# ---------------------------------------------------------------------------
# Kernels
# ---------------------------------------------------------------------------
def _qkv_proj_kernel(x_ref, w_ref, b_ref, q_ref, k_ref, v_ref):
    """Fused q/k/v projection for one (tm, C) row tile.

    One MXU stream with N=3C (single weight push / result drain) instead of
    three separate dots; f32 accumulation, bf16 stores.  The attention scale
    is pre-folded into the q columns of the fused weight/bias in the wrapper.
    """
    C = q_ref.shape[-1]
    out = jnp.dot(x_ref[...], w_ref[...],
                  preferred_element_type=jnp.float32) + b_ref[...]
    q_ref[...] = out[:, :C].astype(q_ref.dtype)
    k_ref[...] = out[:, C:2 * C].astype(k_ref.dtype)
    v_ref[...] = out[:, 2 * C:].astype(v_ref.dtype)


def _flash_attn_kernel(q_ref, k_ref, v_ref, o_ref,
                       qh_scr, m_scr, l_scr, acc_scr,
                       *, n_head, head_dim, block_q, block_k):
    """Causal flash attention over lane-dense (tq, C) / (tk, C) tiles.

    Head split/merge happens in VMEM (static per-head lane slices), so q/k/v
    and the output stay in (B*T, C) layout in HBM: no XLA transposes, and all
    HBM stores are lane-dense C-wide.  Grid = (B, T//tq, T//tk); kv axis (2)
    is the reduction axis.  Online-softmax statistics live in f32 scratch.
    """
    qi = pl.program_id(1)
    ki = pl.program_id(2)
    q_start = qi * block_q
    k_start = ki * block_k
    nh, hd = n_head, head_dim

    @pl.when(ki == 0)
    def _init():
        # Split q into heads once per (b, q-tile): nh static lane slices into
        # a heads-major VMEM scratch (no per-kv-step relayout of q).
        qt = q_ref[...]                               # (tq, C) bf16
        for n in range(nh):
            qh_scr[n] = qt[:, n * hd:(n + 1) * hd]
        m_scr[...] = jnp.full(m_scr.shape, -jnp.inf, dtype=jnp.float32)
        l_scr[...] = jnp.zeros(l_scr.shape, dtype=jnp.float32)
        acc_scr[...] = jnp.zeros(acc_scr.shape, dtype=jnp.float32)

    # Skip kv tiles entirely above the causal diagonal.  Their K/V DMA is also
    # elided because the kv index_map in the wrapper clamps to the last valid
    # block, so these grid steps cost only the ~per-step overhead.
    @pl.when(k_start <= q_start + block_q - 1)
    def _compute():
        kt = k_ref[...]                               # (tk, C) bf16
        vt = v_ref[...]

        def attend_head(n, bias):
            k_n = kt[:, n * hd:(n + 1) * hd]          # (tk, hd)
            v_n = vt[:, n * hd:(n + 1) * hd]
            s_n = lax.dot_general(                     # q @ k^T (NT) on the MXU
                qh_scr[n], k_n,
                dimension_numbers=(((1,), (1,)), ((), ())),
                preferred_element_type=jnp.float32)    # (tq, tk) f32
            if bias is not None:
                s_n = s_n + bias
            m_prev = m_scr[n]
            m_new = jnp.maximum(m_prev, s_n.max(axis=-1, keepdims=True))
            alpha = jnp.exp(m_prev - m_new)
            p = jnp.exp(s_n - m_new)                   # f32 softmax stats
            l_scr[n] = alpha * l_scr[n] + p.sum(axis=-1, keepdims=True)
            acc_scr[n] = alpha * acc_scr[n] + jnp.dot(
                p.astype(v_n.dtype), v_n, preferred_element_type=jnp.float32)
            m_scr[n] = m_new

        # Only diagonal-straddling tiles pay for the mask (iota / compare /
        # select / add); fully-below-diagonal tiles take the unmasked path.
        straddles = (k_start + block_k - 1) > q_start

        @pl.when(straddles)
        def _masked():
            row = q_start + lax.broadcasted_iota(
                jnp.int32, (block_q, block_k), 0)
            col = k_start + lax.broadcasted_iota(
                jnp.int32, (block_q, block_k), 1)
            # Additive -1e30 bias (robust: exp underflows to 0, never NaN).
            bias = jnp.where(row >= col, 0.0, -1e30).astype(jnp.float32)
            for n in range(nh):
                attend_head(n, bias)

        @pl.when(jnp.logical_not(straddles))
        def _unmasked():
            for n in range(nh):
                attend_head(n, None)

    @pl.when(ki == pl.num_programs(2) - 1)
    def _finalize():
        # Merge heads in VMEM and store one lane-dense (tq, C) block.
        parts = []
        for n in range(nh):
            inv_l = pl.reciprocal(l_scr[n], approx=True)   # EUP, not a divide
            parts.append(acc_scr[n] * inv_l)
        o_ref[...] = jnp.concatenate(parts, axis=-1).astype(o_ref.dtype)


def _out_proj_kernel(y_ref, wp_ref, bp_ref, o_ref):
    """Output projection for one (tm, C) row tile; lane-dense (tm, C) store."""
    o_ref[...] = (jnp.dot(y_ref[...], wp_ref[...],
                          preferred_element_type=jnp.float32)
                  + bp_ref[...]).astype(o_ref.dtype)


# ---------------------------------------------------------------------------
# Wrapper
# ---------------------------------------------------------------------------
def re_causal_self_attention(x, params, gen_type="t2i",
                             compute_dtype=jnp.bfloat16,
                             block_q=256, block_k=256, block_m=512):
    """Forward of ReCausalSelfAttentionL3 (prev_m=None path).

    x: (B, T, C) float32 -> (B, T, C) in x.dtype.
    Defaults target v6e/v7x (256-wide MXU); sweep block_q/block_k down to 128
    on v5e.  gen_type selects mask_t2i vs mask_i2t; with no `n_unmasked`
    attribute both are plain lower-triangular, so the causal mask is generated
    in-kernel and gen_type is irrelevant.
    """
    del gen_type  # both mask variants are plain tril here
    B, T, C = x.shape
    nh = params["n_head"]
    assert C % nh == 0
    hd = C // nh
    scale = 1.0 / math.sqrt(hd)

    # bf16 on the MXU; accumulation / biases / softmax stats stay f32.
    xc = x.astype(compute_dtype)
    # Fused (C, 3C) QKV weight, with the attention scale folded into the q
    # columns (and q bias) so it is applied exactly once, for free.
    wqkv = jnp.concatenate(
        [params["wq"] * scale, params["wk"], params["wv"]], axis=1
    ).astype(compute_dtype)
    bqkv = jnp.concatenate(
        [params["bq"] * scale, params["bk"], params["bv"]], axis=1
    ).astype(jnp.float32)
    wp = params["wp"].astype(compute_dtype)
    bp = params["bp"].astype(jnp.float32)

    # ---- 1) fused QKV projection, row-tiled over flattened (B*T, C) ----
    R = B * T
    tm = _pick_tile(R, block_m)
    x2 = xc.reshape(R, C)

    row_spec = pl.BlockSpec((tm, C), lambda i: (i, 0))
    # Constant index_map -> weights fetched once, resident across the grid.
    wqkv_spec = pl.BlockSpec((C, 3 * C), lambda i: (0, 0))
    bqkv_spec = pl.BlockSpec((1, 3 * C), lambda i: (0, 0))

    qkv_cost = pl.CostEstimate(
        flops=2 * R * C * 3 * C,
        transcendentals=0,
        bytes_accessed=R * C * 2 + 3 * C * C * 2 + 3 * C * 4 + 3 * R * C * 2)

    q2, k2, v2 = pl.pallas_call(
        _qkv_proj_kernel,
        grid=(R // tm,),
        in_specs=[row_spec, wqkv_spec, bqkv_spec],
        out_specs=[row_spec, row_spec, row_spec],
        out_shape=[jax.ShapeDtypeStruct((R, C), compute_dtype)] * 3,
        cost_estimate=qkv_cost,
        compiler_params=pltpu.CompilerParams(
            dimension_semantics=("parallel",)),
    )(x2, wqkv, bqkv)

    # ---- 2) flash attention: grid (B, T//tq, T//tk), online softmax ----
    # q/k/v stay flat (B*T, C); row-block index = b * (T//tile) + tile_idx.
    tq = _pick_tile(T, block_q)
    tk = _pick_tile(T, block_k)
    nq = T // tq
    nk = T // tk

    def q_index(b, qi, ki):
        return (b * nq + qi, 0)

    def kv_index(b, qi, ki):
        # Clamp above-diagonal kv tiles to the last causally-valid block so
        # Pallas elides their K/V DMA (their compute is skipped in-kernel).
        kmax = (qi * tq + tq - 1) // tk
        return (b * nk + jnp.minimum(ki, kmax), 0)

    q_spec = pl.BlockSpec((tq, C), q_index)
    kv_spec = pl.BlockSpec((tk, C), kv_index)
    o_spec = pl.BlockSpec((tq, C), q_index)

    flash_cost = pl.CostEstimate(
        flops=4 * B * nh * T * T * hd,
        transcendentals=B * nh * T * T,
        bytes_accessed=3 * R * C * 2 + R * C * 2)

    y2 = pl.pallas_call(
        functools.partial(_flash_attn_kernel, n_head=nh, head_dim=hd,
                          block_q=tq, block_k=tk),
        grid=(B, nq, nk),
        in_specs=[q_spec, kv_spec, kv_spec],
        out_specs=o_spec,
        out_shape=jax.ShapeDtypeStruct((R, C), compute_dtype),
        scratch_shapes=[
            pltpu.VMEM((nh, tq, hd), compute_dtype),   # heads-major q
            pltpu.VMEM((nh, tq, 1), jnp.float32),      # running max  m
            pltpu.VMEM((nh, tq, 1), jnp.float32),      # running sum  l
            pltpu.VMEM((nh, tq, hd), jnp.float32),     # output accumulator
        ],
        cost_estimate=flash_cost,
        compiler_params=pltpu.CompilerParams(
            dimension_semantics=("parallel", "parallel", "arbitrary")),
    )(q2, k2, v2)

    # ---- 3) output projection (consumes the flat (R, C) slab directly) ----
    wp_spec = pl.BlockSpec((C, C), lambda i: (0, 0))
    bp_spec = pl.BlockSpec((1, C), lambda i: (0, 0))

    proj_cost = pl.CostEstimate(
        flops=2 * R * C * C,
        transcendentals=0,
        bytes_accessed=R * C * 2 + C * C * 2 + C * 4
        + R * C * jnp.dtype(x.dtype).itemsize)

    out = pl.pallas_call(
        _out_proj_kernel,
        grid=(R // tm,),
        in_specs=[row_spec, wp_spec, bp_spec],
        out_specs=row_spec,
        out_shape=jax.ShapeDtypeStruct((R, C), x.dtype),
        cost_estimate=proj_cost,
        compiler_params=pltpu.CompilerParams(
            dimension_semantics=("parallel",)),
    )(y2, wp, bp)

    return out.reshape(B, T, C)


# ---------------------------------------------------------------------------
# Params + pure-JAX reference (f32)
# ---------------------------------------------------------------------------
def init_params(key, n_embd, n_head, block_size):
    ks = jax.random.split(key, 8)
    s = 1.0 / math.sqrt(n_embd)
    return {
        "wq": jax.random.uniform(ks[0], (n_embd, n_embd), jnp.float32, -s, s),
        "wk": jax.random.uniform(ks[1], (n_embd, n_embd), jnp.float32, -s, s),
        "wv": jax.random.uniform(ks[2], (n_embd, n_embd), jnp.float32, -s, s),
        "wp": jax.random.uniform(ks[3], (n_embd, n_embd), jnp.float32, -s, s),
        "bq": jax.random.uniform(ks[4], (1, n_embd), jnp.float32, -s, s),
        "bk": jax.random.uniform(ks[5], (1, n_embd), jnp.float32, -s, s),
        "bv": jax.random.uniform(ks[6], (1, n_embd), jnp.float32, -s, s),
        "bp": jax.random.uniform(ks[7], (1, n_embd), jnp.float32, -s, s),
        # No `n_unmasked` attribute in config -> both masks are plain tril.
        "mask_t2i": jnp.tril(jnp.ones((block_size, block_size), jnp.float32)),
        "mask_i2t": jnp.tril(jnp.ones((block_size, block_size), jnp.float32)),
        "n_head": n_head,
    }


def reference_forward(x, params, gen_type="t2i"):
    """Pure-JAX f32 reference matching the PyTorch forward (prev_m=None, eval)."""
    B, T, C = x.shape
    nh = params["n_head"]
    hd = C // nh

    def lin(t, w, b):
        return t @ w + b

    k = lin(x, params["wk"], params["bk"]).reshape(B, T, nh, hd).transpose(0, 2, 1, 3)
    q = lin(x, params["wq"], params["bq"]).reshape(B, T, nh, hd).transpose(0, 2, 1, 3)
    v = lin(x, params["wv"], params["bv"]).reshape(B, T, nh, hd).transpose(0, 2, 1, 3)

    att = jnp.einsum("bhqd,bhkd->bhqk", q, k) * (1.0 / math.sqrt(hd))
    mask = (params["mask_t2i"] if gen_type == "t2i" else params["mask_i2t"])[:T, :T]
    att = jnp.where(mask[None, None] == 0, -jnp.inf, att)
    att = jax.nn.softmax(att, axis=-1)
    y = jnp.einsum("bhqk,bhkd->bhqd", att, v)
    y = y.transpose(0, 2, 1, 3).reshape(B, T, C)
    return lin(y, params["wp"], params["bp"])


if __name__ == "__main__":
    B, T, C, n_head, block_size = 2, 64, 128, 4, 64

    key = jax.random.PRNGKey(0)
    kx, kp = jax.random.split(key)
    x = jax.random.normal(kx, (B, T, C), jnp.float32)
    params = init_params(kp, C, n_head, block_size)

    # Small (but bf16-legal, 16-row) tiles so the multi-tile online-softmax,
    # diagonal-mask-only, and above-diagonal skip + kv-DMA-clamp paths are all
    # exercised even at this tiny test shape (flash grid = (2, 4, 4)).
    out = re_causal_self_attention(x, params, gen_type="t2i",
                                   block_q=16, block_k=16, block_m=64)
    out = jax.block_until_ready(out)

    ref = reference_forward(x, params, gen_type="t2i")
    # bf16 MXU inputs (f32 accumulation) + approx reciprocal -> relaxed
    # tolerance vs the f32 reference.
    np.testing.assert_allclose(np.asarray(out), np.asarray(ref),
                               rtol=5e-2, atol=5e-2)

    print("KERNEL_OK")
</pallas_src>

<mosaic_0001>
module attributes {stable_mosaic.version = 11 : i64} {
  func.func @_qkv_proj_kernel(%arg0: i32, %arg1: memref<64x128xbf16, #tpu.memory_space<vmem>>, %arg2: memref<128x384xbf16, #tpu.memory_space<vmem>>, %arg3: memref<1x384xf32, #tpu.memory_space<vmem>>, %arg4: memref<64x128xbf16, #tpu.memory_space<vmem>>, %arg5: memref<64x128xbf16, #tpu.memory_space<vmem>>, %arg6: memref<64x128xbf16, #tpu.memory_space<vmem>>) attributes {dimension_semantics = [#tpu.dimension_semantics<parallel>], iteration_bounds = array<i64: 2>, scalar_prefetch = 0 : i64, scratch_operands = 0 : i64, tpu.core_type = #tpu.core_type<tc>, window_params = [{transform_indices = @transform_0, window_bounds = array<i64: 64, 128>}, {pipeline_mode = #tpu.pipeline_mode<synchronous>, transform_indices = @transform_1, window_bounds = array<i64: 128, 384>}, {pipeline_mode = #tpu.pipeline_mode<synchronous>, transform_indices = @transform_2, window_bounds = array<i64: 1, 384>}, {transform_indices = @transform_3, window_bounds = array<i64: 64, 128>}, {transform_indices = @transform_4, window_bounds = array<i64: 64, 128>}, {transform_indices = @transform_5, window_bounds = array<i64: 64, 128>}]} {
    %c0 = arith.constant 0 : index
    %c0_0 = arith.constant 0 : index
    %0 = vector.load %arg1[%c0, %c0_0] : memref<64x128xbf16, #tpu.memory_space<vmem>>, vector<64x128xbf16>
    %c0_1 = arith.constant 0 : index
    %c0_2 = arith.constant 0 : index
    %1 = vector.load %arg2[%c0_1, %c0_2] : memref<128x384xbf16, #tpu.memory_space<vmem>>, vector<128x384xbf16>
    %cst = arith.constant dense<0.000000e+00> : vector<64x384xf32>
    %2 = tpu.matmul %0, %1, %cst {dimension_numbers = #tpu.dot_dimension_numbers<[1], [0], [0], [1], [0, 0, 1, 1], [], []>} : vector<64x128xbf16>, vector<128x384xbf16>, vector<64x384xf32> -> vector<64x384xf32>
    %c0_3 = arith.constant 0 : index
    %c0_4 = arith.constant 0 : index
    %3 = vector.load %arg3[%c0_3, %c0_4] : memref<1x384xf32, #tpu.memory_space<vmem>>, vector<1x384xf32>
    %4 = vector.broadcast %3 : vector<1x384xf32> to vector<64x384xf32>
    %5 = arith.addf %2, %4 : vector<64x384xf32>
    %6 = vector.extract_strided_slice %5 {offsets = [0, 0], sizes = [64, 128], strides = [1, 1]} : vector<64x384xf32> to vector<64x128xf32>
    %7 = arith.truncf %6 : vector<64x128xf32> to vector<64x128xbf16>
    %c0_5 = arith.constant 0 : index
    %c0_6 = arith.constant 0 : index
    %8 = vector.load %arg4[%c0_5, %c0_6] : memref<64x128xbf16, #tpu.memory_space<vmem>>, vector<64x128xbf16>
    tpu.vector_store %arg4[%c0_5, %c0_6], %7 {strides = array<i32>} : memref<64x128xbf16, #tpu.memory_space<vmem>>, vector<64x128xbf16>,
    %9 = vector.extract_strided_slice %5 {offsets = [0, 128], sizes = [64, 128], strides = [1, 1]} : vector<64x384xf32> to vector<64x128xf32>
    %10 = arith.truncf %9 : vector<64x128xf32> to vector<64x128xbf16>
    %c0_7 = arith.constant 0 : index
    %c0_8 = arith.constant 0 : index
    %11 = vector.load %arg5[%c0_7, %c0_8] : memref<64x128xbf16, #tpu.memory_space<vmem>>, vector<64x128xbf16>
    tpu.vector_store %arg5[%c0_7, %c0_8], %10 {strides = array<i32>} : memref<64x128xbf16, #tpu.memory_space<vmem>>, vector<64x128xbf16>,
    %12 = vector.extract_strided_slice %5 {offsets = [0, 256], sizes = [64, 128], strides = [1, 1]} : vector<64x384xf32> to vector<64x128xf32>
    %13 = arith.truncf %12 : vector<64x128xf32> to vector<64x128xbf16>
    %c0_9 = arith.constant 0 : index
    %c0_10 = arith.constant 0 : index
    %14 = vector.load %arg6[%c0_9, %c0_10] : memref<64x128xbf16, #tpu.memory_space<vmem>>, vector<64x128xbf16>
    tpu.vector_store %arg6[%c0_9, %c0_10], %13 {strides = array<i32>} : memref<64x128xbf16, #tpu.memory_space<vmem>>, vector<64x128xbf16>,
    return
  }
  func.func @transform_0(%arg0: i32) -> (i32, i32) {
    %c0_i32 = arith.constant 0 : i32
    %c0_i32_0 = arith.constant 0 : i32
    return %arg0, %c0_i32 : i32, i32
  }
  func.func @transform_1(%arg0: i32) -> (i32, i32) {
    %c0_i32 = arith.constant 0 : i32
    %c0_i32_0 = arith.constant 0 : i32
    %c0_i32_1 = arith.constant 0 : i32
    return %c0_i32, %c0_i32_0 : i32, i32
  }
  func.func @transform_2(%arg0: i32) -> (i32, i32) {
    %c0_i32 = arith.constant 0 : i32
    %c0_i32_0 = arith.constant 0 : i32
    %c0_i32_1 = arith.constant 0 : i32
    return %c0_i32, %c0_i32_0 : i32, i32
  }
  func.func @transform_3(%arg0: i32) -> (i32, i32) {
    %c0_i32 = arith.constant 0 : i32
    %c0_i32_0 = arith.constant 0 : i32
    return %arg0, %c0_i32 : i32, i32
  }
  func.func @transform_4(%arg0: i32) -> (i32, i32) {
    %c0_i32 = arith.constant 0 : i32
    %c0_i32_0 = arith.constant 0 : i32
    return %arg0, %c0_i32 : i32, i32
  }
  func.func @transform_5(%arg0: i32) -> (i32, i32) {
    %c0_i32 = arith.constant 0 : i32
    %c0_i32_0 = arith.constant 0 : i32
    return %arg0, %c0_i32 : i32, i32
  }
}

</mosaic_0001>

<bundles_post_ra>
// kernel: tpu_custom_call.1
= control target key start
LH: loop header
LB: loop body
LE: loop exit
PB: predicated region body
PF: predicated region fallthrough
CT: control target
= control target key end

     0   :  { %s1687_s0 = inlined_call_operand.hbm [shape: bf16[128,128], index: 0, kind: input, shape index: {}]   ;;  %s1688_s1 = inlined_call_operand.hbm [shape: bf16[128,384], index: 1, kind: input, shape index: {}]   ;;  %s1689_s2 = inlined_call_operand.hbm [shape: f32[1,384], index: 2, kind: input, shape index: {}]   ;;  %s1690_s3 = inlined_call_operand.hbm [shape: bf16[128,128], index: 3, kind: output, shape index: {0}]   ;;  %s1691_s4 = inlined_call_operand.hbm [shape: bf16[128,128], index: 4, kind: output, shape index: {1}]   ;;  %s1692_s5 = inlined_call_operand.hbm [shape: bf16[128,128], index: 5, kind: output, shape index: {2}]  }
   0x1   :  { %1694 = sst [smem:[#allocation16_spill]] %s1687_s0 }
   0x2   :  { %1695 = sst [smem:[#allocation17_spill]] %s1688_s1 }
   0x3   :  { %1696 = sst [smem:[#allocation18_spill]] %s1689_s2 }
   0x4   :  { %11 = vsyncpa [#allocation3], 0 }
   0x5   :  { %13 = vsyncpa [#allocation3 + $0x1], 0 }
   0x6   :  { %14 = vsyncpa [#allocation6], 0 }
   0x7   :  { %15 = vsyncpa [#allocation4], 0 }
   0x8   :  { %17 = vsyncpa [#allocation4 + $0x1], 0 }
   0x9   :  { %18 = vsyncpa [#allocation10], 0 }
   0xa   :  { %20 = vsyncpa [#allocation10 + $0x1], 0  ;;  %s1438_s18 = smov 0   ;;  %s1440_s19 = smov 0  }
   0xb   :  { %s1442_s20 = smov 0   ;;  %s1444_s21 = smov 0  }
   0xc LB: > { %s1459_s22 = sadd.s32 4294967295, %s1398_s21   ;;  %s1693_s23 = sadd.s32 4294967294, %s1398_s21   ;;  %s1398_s21 = sphi %s1444_s21, %s1710_s21   ;;  %s1394_s20 = sphi %s1442_s20, %s1709_s20   ;;  %s1390_s19 = sphi %s1440_s19, %s1708_s19   ;;  %s1386_s18 = sphi %s1438_s18, %s1707_s18  }
   0xd   : > { %p46_p0 = scmp.ne.s32.totalorder %s1390_s19, %s1386_s18  ;;  %p47_p1 = scmp.eq.s32.totalorder %s1459_s22, 0 }
   0xe   : > { %p112_p2 = scmp.eq.s32.totalorder %s1459_s22, 1  ;;  %p118_p3 = scmp.eq.s32.totalorder %s1693_s23, 1 }
   0xf   : > { %p1470_p4 = por %p47_p1, %p46_p0  ;;  %p849_p5 = scmp.ge.s32.totalorder %s1398_s21, 1 }
  0x10   : > { %p1475_p6 = por %p118_p3, %p46_p0  ;;  %p177_p7 = scmp.lt.s32.totalorder %s1398_s21, 3 }
  0x11   : > { %s1699_s1 = sld [smem:[#allocation17_spill]]  ;;  %s1400_s30 = smov [#allocation5]  }
  0x12   : > { %p1483_p8 = pnand %p849_p5, %p177_p7  ;;  %s190_s6 = sshll.u32 %s1400_s30, 4  ;;  %s191_s6 = int_to_ptr.vmem [resolvable:$true] %s190_s6 }
  0x13   : > { %s1701_s2 = sld [smem:[#allocation18_spill]]  ;;  %s1401_s10 = smov 192  }
  0x14   : > { %p1111_p9 = pneg %p1483_p8  ;;  %s1402_s11 = smov 12  }
  0x15   : > { %s1403_s12 = smov [#allocation7]   ;;  %s1496_s14 = sadd.s32 1, %s1398_s21  }
  0x16   : > { %p1112_p10 = pnand %p1111_p9, %p47_p1  ;;  %s205_s13 = sshll.u32 %s1403_s12, 4  ;;  %s206_s13 = int_to_ptr.vmem [resolvable:$true] %s205_s13 }
  0x17   : > { %s188_s28 = sshll.u32 %s1699_s1, 4  ;;  %s33_s15 = sadd.s32 1, %s1394_s20  ;;  %s189_s28 = int_to_ptr.hbm [resolvable:$true] %s188_s28 }
  0x18   : > { %1114 = dma.hbm_to_vmem [thread:$0]  (!%p1112_p10), %s189_s28, 3072, %s191_s6, [#allocation6], %s1401_s10, %s1401_s10, %s1402_s11  }
  0x19   : > { %s203_s9 = sshll.u32 %s1701_s2, 4  ;;  %s30_s16 = ssub.s32 %s1398_s21, %s1496_s14  ;;  %s204_s9 = int_to_ptr.hbm [resolvable:$true] %s203_s9 }
  0x1a   : > { %1117 = dma.hbm_to_vmem [thread:$0]  (!%p1112_p10), %s204_s9, 48, %s206_s13, [#allocation6]  }
  0x1b   : > { %p40_p12 = scmp.ne.s32.totalorder %s1394_s20, %s1390_s19  ;;  %p31_p13 = scmp.eq.s32.totalorder %s30_s16, 0 }
  0x1c   : > { %p41_p0 = scmp.eq.s32.totalorder %s1398_s21, 0  ;;  %p1134_p5 = scmp.lt.s32.totalorder %s1398_s21, 2 }
  0x1d   : > { %p1506_p3 = por %p112_p2, %p40_p12  ;;  %s216_s27 = sand.u32 1, %s1394_s20  }
  0x1e   : > { %s1512_s26 = scalar_select %p31_p13, %s1394_s20, %s33_s15  }
  0x1f   : > { %p42_p7 = por %p41_p0, %p40_p12  ;;  %s853_s28 = sshll.u32 %s216_s27, 5 }
  0x20   : > { %s986_s30 = sshll.u32 %s1398_s21, 5  ;;  %s1703_s0 = sld [smem:[#allocation16_spill]] }
  0x21   : > { %s220_s9 = scalar_lea.vmem [#allocation2], %s853_s28  ;;  %p1519_p2 = pnand %p1134_p5, %p42_p7 }
  0x22   : > { %s228_s10 = sshll.u32 %s220_s9, 4  ;;  %s217_s13 = scalar_lea.sflag [#allocation3], %s216_s27  ;;  %s229_s10 = int_to_ptr.vmem [resolvable:$true] %s228_s10 }
  0x23   : > { %p1242_p10 = pneg %p1519_p2 }
  0x26   : > { %s225_s8 = scalar_lea.hbm %s1703_s0, %s986_s30  ;;  %s1245_s6 = scalar_lea.hbm %s1703_s0, 64 }
  0x27   : > { %s226_s11 = sshll.u32 %s225_s8, 4  ;;  %s227_s11 = int_to_ptr.hbm [resolvable:$true] %s226_s11 }
  0x28   : > { %s1238_s15 = sshra.s32 %s227_s11, 4  ;;  %s1239_s15 = int_to_ptr.hbm [resolvable:$true] %s1238_s15 }
  0x29   : > { %s1240_s16 = scalar_lea.hbm %s1239_s15, 32  ;;  %p1246_p0 = scmp.lt.s32.totalorder %s1239_s15, %s1703_s0 }
  0x2a   : > { %p1241_p9 = scmp.ne.s32.totalorder %s1239_s15, %s1240_s16  ;;  %p1247_p5 = scmp.lt.s32.totalorder %s1245_s6, %s1240_s16 }
  0x2c   : > { %p1243_p12 = pnand %p1242_p10, %p1241_p9  ;;  %p1248_p7 = por %p1247_p5, %p1246_p0 }
  0x2e   : > { %p1244_p13 = pneg %p1243_p12 }
  0x30   : > { %p1249_p11 = pnand %p1248_p7, %p1244_p13 }
  0x32   : > { %1252 = shalt.err (!%p1249_p11)
}
  0x33   : > { %s1404_s27 = smov 64   ;;  %s1405_s9 = smov 4  }
  0x34   : > { %1121 = dma.hbm_to_vmem [thread:$0]  (!%p1519_p2), %s227_s11, 512, %s229_s10, %s217_s13, %s1404_s27, %s1404_s27, %s1405_s9  }
  0x35   : > { %240 = sbr.rel (%p1483_p8) target bundleno = 306 (0x132), region = 32  ;;  %s1536_s30 = sand.u32 (!%p1483_p8), 1, %s1390_s19  }
  0x36   : > { %s1539_s28 = sshll.u32 (!%p1483_p8), %s1536_s30, 5  ;;  %s243_s15 = scalar_lea.sflag (!%p1483_p8), [#allocation3], %s1536_s30 }
  0x37   : > { %s1543_s16 = scalar_lea.vmem (!%p1483_p8), [#allocation2], %s1539_s28 }
  0x3a   : > { %1369 = dma.done.wait (%p1470_p4), %s243_s15, 512  }
  0x3b   : > { %1371 = vsyncadd (%p1470_p4), %s243_s15, 4294966784 }
  0x3c   : > { %1373 = dma.done.wait (%p47_p1), [#allocation6], 3120  }
  0x3d   : > { %1375 = vsyncadd (%p47_p1), [#allocation6], 4294964176  ;;  %v1012_v0 = vld [vmem:[#allocation5 + $0xac] sm:$0xf]  ;;  %v967_v1 = vld [vmem:[#allocation5 + $0xb4] sm:$0xf0] }
  0x3e   : > { %v973_v2 = vld [vmem:[#allocation5 + $0xb0] sm:$0xf]  ;;  %v970_v3 = vor.u32 %v1012_v0, %v967_v1  ;;  %v1014_v4 = vld [vmem:[#allocation5 + $0xb8] sm:$0xf0]  ;;  %v1009_v5 = vld [vmem:[#allocation5 + $0x94] sm:$0xf] }
  0x3f   : > { %v955_v6 = vld [vmem:[#allocation5 + $0x9c] sm:$0xf0]  ;;  %v974_v7 = vor.u32 %v1014_v4, %v973_v2  ;;  %v961_v8 = vld [vmem:[#allocation5 + $0x98] sm:$0xf]  ;;  %v1011_v9 = vld [vmem:[#allocation5 + $0xa0] sm:$0xf0] }
  0x40   : > { %v965_v10 = vld [vmem:[#allocation5 + $0xa8] sm:$0xf]  ;;  %527 = vmatpush.bf16.msra.mxu1 %v970_v3  ;;  %v958_v11 = vor.u32 %v1009_v5, %v955_v6  ;;  %v1013_v12 = vld [vmem:[#allocation5 + $0xb0] sm:$0xf0]  ;;  %v962_v13 = vor.u32 %v1011_v9, %v961_v8  ;;  %v1006_v15 = vld [vmem:[#allocation5 + $0x7c] sm:$0xf] }
  0x41   : > { %556 = vmatpush.bf16.msra.mxu2 %v974_v7  ;;  %v966_v14 = vor.u32 %v1013_v12, %v965_v10  ;;  %v943_v16 = vld [vmem:[#allocation5 + $0x84] sm:$0xf0]  ;;  %v953_v17 = vld [vmem:[#allocation5 + $0x90] sm:$0xf]  ;;  %v949_v18 = vld [vmem:[#allocation5 + $0x80] sm:$0xf] }
  0x42   : > { %v1008_v19 = vld [vmem:[#allocation5 + $0x88] sm:$0xf0]  ;;  %v1010_v20 = vld [vmem:[#allocation5 + $0x98] sm:$0xf0]  ;;  %v946_v22 = vor.u32 %v1006_v15, %v943_v16  ;;  %v941_v23 = vld [vmem:[#allocation5 + $0x78] sm:$0xf] }
  0x43   : > { %1087 = vmatpush.bf16.msra.mxu3 %v966_v14  ;;  %v954_v21 = vor.u32 %v1010_v20, %v953_v17  ;;  %498 = vmatpush.bf16.msra.mxu0 %v966_v14  ;;  %v1007_v24 = vld [vmem:[#allocation5 + $0x80] sm:$0xf0]  ;;  %v950_v25 = vor.u32 %v1008_v19, %v949_v18  ;;  %v931_v27 = vld [vmem:[#allocation5 + $0x6c] sm:$0xf0]  ;;  %v937_v28 = vld [vmem:[#allocation5 + $0x68] sm:$0xf] }
  0x44   : > { %528 = vmatpush.bf16.msra.mxu1 %v958_v11  ;;  %v1003_v26 = vld [vmem:[#allocation5 + $0x64] sm:$0xf]  ;;  %v1005_v29 = vld [vmem:[#allocation5 + $0x70] sm:$0xf0]  ;;  %v942_v30 = vor.u32 %v1007_v24, %v941_v23  ;;  %v929_v32 = vld [vmem:[#allocation5 + $0x60] sm:$0xf] }
  0x45   : > { %557 = vmatpush.bf16.msra.mxu2 %v962_v13  ;;  %v934_v31 = vor.u32 %v1003_v26, %v931_v27  ;;  %v1004_v33 = vld [vmem:[#allocation5 + $0x68] sm:$0xf0]  ;;  %v938_v34 = vor.u32 %v1005_v29, %v937_v28  ;;  %v919_v36 = vld [vmem:[#allocation5 + $0x54] sm:$0xf0]  ;;  %v925_v37 = vld [vmem:[#allocation5 + $0x50] sm:$0xf] }
  0x46   : > { %v1000_v35 = vld [vmem:[#allocation5 + $0x4c] sm:$0xf]  ;;  %v1002_v38 = vld [vmem:[#allocation5 + $0x58] sm:$0xf0]  ;;  %v930_v39 = vor.u32 %v1004_v33, %v929_v32  ;;  %v917_v41 = vld [vmem:[#allocation5 + $0x48] sm:$0xf] }
  0x47   : > { %1088 = vmatpush.bf16.msra.mxu3 %v954_v21  ;;  %499 = vmatpush.bf16.msra.mxu0 %v954_v21  ;;  %v922_v40 = vor.u32 %v1000_v35, %v919_v36  ;;  %v1001_v42 = vld [vmem:[#allocation5 + $0x50] sm:$0xf0]  ;;  %v926_v43 = vor.u32 %v1002_v38, %v925_v37  ;;  %v907_v45 = vld [vmem:[#allocation5 + $0x3c] sm:$0xf0]  ;;  %v913_v46 = vld [vmem:[#allocation5 + $0x38] sm:$0xf] }
  0x48   : > { %529 = vmatpush.bf16.msra.mxu1 %v946_v22  ;;  %v997_v44 = vld [vmem:[#allocation5 + $0x34] sm:$0xf]  ;;  %v999_v47 = vld [vmem:[#allocation5 + $0x40] sm:$0xf0]  ;;  %v918_v48 = vor.u32 %v1001_v42, %v917_v41  ;;  %v905_v50 = vld [vmem:[#allocation5 + $0x30] sm:$0xf] }
  0x49   : > { %558 = vmatpush.bf16.msra.mxu2 %v950_v25  ;;  %v910_v49 = vor.u32 %v997_v44, %v907_v45  ;;  %v998_v51 = vld [vmem:[#allocation5 + $0x38] sm:$0xf0]  ;;  %v914_v52 = vor.u32 %v999_v47, %v913_v46  ;;  %v895_v54 = vld [vmem:[#allocation5 + $0x24] sm:$0xf0]  ;;  %v901_v55 = vld [vmem:[#allocation5 + $0x20] sm:$0xf] }
  0x4a   : > { %v994_v53 = vld [vmem:[#allocation5 + $0x1c] sm:$0xf]  ;;  %v996_v56 = vld [vmem:[#allocation5 + $0x28] sm:$0xf0]  ;;  %v906_v57 = vor.u32 %v998_v51, %v905_v50  ;;  %v893_v59 = vld [vmem:[#allocation5 + $0x18] sm:$0xf] }
  0x4b   : > { %1089 = vmatpush.bf16.msra.mxu3 %v942_v30  ;;  %500 = vmatpush.bf16.msra.mxu0 %v942_v30  ;;  %v898_v58 = vor.u32 %v994_v53, %v895_v54  ;;  %v995_v60 = vld [vmem:[#allocation5 + $0x20] sm:$0xf0]  ;;  %v902_v61 = vor.u32 %v996_v56, %v901_v55  ;;  %v883_v63 = vld [vmem:[#allocation5 + $0xc] sm:$0xf0]  ;;  %v889_v0 = vld [vmem:[#allocation5 + $0x8] sm:$0xf] }
  0x4c   : > { %530 = vmatpush.bf16.msra.mxu1 %v934_v31  ;;  %v991_v62 = vld [vmem:[#allocation5 + $0x4] sm:$0xf]  ;;  %v993_v1 = vld [vmem:[#allocation5 + $0x10] sm:$0xf0]  ;;  %v894_v2 = vor.u32 %v995_v60, %v893_v59  ;;  %v881_v4 = vld [vmem:[#allocation5] sm:$0xf] }
  0x4d   : > { %559 = vmatpush.bf16.msra.mxu2 %v938_v34  ;;  %v886_v3 = vor.u32 %v991_v62, %v883_v63  ;;  %v992_v5 = vld [vmem:[#allocation5 + $0x8] sm:$0xf0]  ;;  %v890_v6 = vor.u32 %v993_v1, %v889_v0  ;;  %v987_v7 = vld [vmem:[%s1543_s16] sm:$0xff]  ;;  %v989_v10 = vld [vmem:[%s1543_s16 + $0x10] sm:$0xff]  ;;  %s1564_s24 = scalar_lea.vmem [#allocation9], %s1539_s28  ;;  %s1570_s29 = scalar_lea.vmem [#allocation11], %s1539_s28 }
  0x4e   : > { %v882_v8 = vor.u32 %v992_v5, %v881_v4  ;;  %v988_v9 = vld [vmem:[%s1543_s16 + $0x8] sm:$0xff]  ;;  %v990_v11 = vld [vmem:[%s1543_s16 + $0x18] sm:$0xff]  ;;  %v338_v13 = vld [vmem:[#allocation7] sm:$0x7]  ;;  %s1574_s10 = scalar_lea.vmem [#allocation8], %s1539_s28  ;;  %s1588_s11 = sshll.u32 %s1459_s22, 5 }
  0x4f   : > { %1090 = vmatpush.bf16.msra.mxu3 %v930_v39  ;;  %501 = vmatpush.bf16.msra.mxu0 %v930_v39  ;;  %v1557_v14 = vperm.slane %v338_v13, 1  ;;  %v1561_v21 = vperm.slane %v338_v13, 2  ;;  %v340_v22 = vperm.slane %v338_v13, 0  ;;  %s655_s6 = scalar_lea.hbm %s1690_s3, %s1588_s11  ;;  %s656_s7 = sshll.u32 %s1574_s10, 4  ;;  %s1600_s7 = int_to_ptr.vmem [resolvable:$true] %s656_s7 }
  0x50   : > { %531 = vmatpush.bf16.msra.mxu1 %v922_v40  ;;  %s1598_s8 = sshll.u32 %s655_s6, 4  ;;  %s672_s28 = scalar_lea.hbm %s1691_s4, %s1588_s11  ;;  %s659_s8 = int_to_ptr.hbm [resolvable:$true] %s1598_s8 }
  0x51   : > { %560 = vmatpush.bf16.msra.mxu2 %v926_v43  ;;  %s673_s15 = sshll.u32 %s1564_s24, 4  ;;  %s634_s16 = scalar_lea.sflag [#allocation4], %s1536_s30  ;;  %s674_s15 = int_to_ptr.vmem [resolvable:$true] %s673_s15 }
  0x52   : > { %s1282_s12 = sshra.s32 %s659_s8, 4  ;;  %s1288_s0 = scalar_lea.hbm %s1690_s3, 64  ;;  %s1283_s12 = int_to_ptr.hbm [resolvable:$true] %s1282_s12 }
  0x53   : > { %1091 = vmatpush.bf16.msra.mxu3 %v918_v48  ;;  %502 = vmatpush.bf16.msra.mxu0 %v918_v48  ;;  %s1284_s13 = scalar_lea.hbm %s1283_s12, 32  ;;  %p1289_p11 = scmp.lt.s32.totalorder %s1283_s12, %s1690_s3 }
  0x54   : > { %532 = vmatpush.bf16.msra.mxu1 %v910_v49  ;;  %p1285_p1 = scmp.ne.s32.totalorder %s1283_s12, %s1284_s13  ;;  %p1290_p2 = scmp.lt.s32.totalorder %s1288_s0, %s1284_s13 }
  0x55   : > { %561 = vmatpush.bf16.msra.mxu2 %v914_v52 }
  0x56   : > { %p1286_p4 = pnand %p1285_p1, %p1506_p3  ;;  %p1291_p9 = por %p1290_p2, %p1289_p11 }
  0x57   : > { %1092 = vmatpush.bf16.msra.mxu3 %v906_v57  ;;  %503 = vmatpush.bf16.msra.mxu0 %v906_v57 }
  0x58   : > { %533 = vmatpush.bf16.msra.mxu1 %v898_v58  ;;  %p1287_p8 = pneg %p1286_p4 }
  0x59   : > { %562 = vmatpush.bf16.msra.mxu2 %v902_v61 }
  0x5a   : > { %p1292_p10 = pnand %p1291_p9, %p1287_p8 }
  0x5b   : > { %1093 = vmatpush.bf16.msra.mxu3 %v894_v2  ;;  %504 = vmatpush.bf16.msra.mxu0 %v894_v2 }
  0x5c   : > { %534 = vmatpush.bf16.msra.mxu1 %v886_v3 }
  0x5d   : > { %563 = vmatpush.bf16.msra.mxu2 %v890_v6 }
  0x5f   : > { %535 = vmatmul.bf16.vlgmr.msra.gmra.mxu1 %v987_v7  ;;  %1094 = vmatpush.bf16.msra.mxu3 %v882_v8 }
  0x60   : > { %564 = vmatmul.bf16.vlgmr.msra.gmra.mxu2 %v987_v7  ;;  %505 = vmatpush.bf16.msra.mxu0 %v882_v8 }
  0x62   : > { %511 = vmatmul.bf16.vlgmr.msra.gmra.mxu3 %v988_v9 }
  0x63   : > { %506 = vmatmul.bf16.vlgmr.msra.gmra.mxu0 %v987_v7 }
  0x6f   : > { %540 = vmatmul.bf16.gmra.mxu1 %v988_v9 }
  0x70   : > { %569 = vmatmul.bf16.gmra.mxu2 %v988_v9 }
  0x72   : > { %516 = vmatmul.bf16.gmra.mxu3 %v989_v10 }
  0x7f   : > { %545 = vmatmul.bf16.gmra.mxu1 %v989_v10 }
  0x80   : > { %574 = vmatmul.bf16.gmra.mxu2 %v989_v10 }
  0x82   : > { %521 = vmatmul.bf16.gmra.mxu3 %v990_v11 }
  0x8f   : > { %550 = vmatmul.bf16.gmra.mxu1 %v990_v11 }
  0x90   : > { %579 = vmatmul.bf16.gmra.mxu2 %v990_v11 }
  0xdc   : > { %v536_v12 = vpop.f32.mrf.mxu1 }
  0xdd   : > { %v537_v17 = vadd.f32 %v536_v12, %v1557_v14 }
  0xe0   : > { %v507_v23 = vpop.f32.mrf.mxu0 }
  0xe1   : > { %v508_v33 = vadd.f32 %v507_v23, %v340_v22 }
  0xe3   : > { %v565_v15 = vpop.f32.mrf.mxu2 }
  0xe4   : > { %v538_v16 = vpop.f32.mrf.mxu1  ;;  %v566_v25 = vadd.f32 %v565_v15, %v1561_v21 }
  0xe5   : > { %v539_v18 = vadd.f32 %v538_v16, %v1557_v14  ;;  %v512_v19 = vpop.f32.mrf.mxu3 }
  0xe6   : > { %v513_v26 = vadd.f32 %v512_v19, %v340_v22 }
  0xe7   : > { %v1041_v20 = vpack.c.bf16 %v539_v18, %v537_v17 }
  0xe8   : > { %v509_v34 = vpop.f32.mrf.mxu0 }
  0xe9   : > { %1042 = vst [vmem:[%s1564_s24] sm:$0xff] %v1041_v20   ;;  %v510_v35 = vadd.f32 %v509_v34, %v340_v22 }
  0xeb   : > { %v567_v24 = vpop.f32.mrf.mxu2  ;;  %v1021_v38 = vpack.c.bf16 %v510_v35, %v508_v33 }
  0xec   : > { %v568_v27 = vadd.f32 %v567_v24, %v1561_v21  ;;  %v541_v28 = vpop.f32.mrf.mxu1 }
  0xed   : > { %v514_v29 = vpop.f32.mrf.mxu3  ;;  %v542_v39 = vadd.f32 %v541_v28, %v1557_v14  ;;  %1022 = vst [vmem:[%s1574_s10] sm:$0xff] %v1021_v38  }
  0xee   : > { %v1061_v30 = vpack.c.bf16 %v568_v27, %v566_v25  ;;  %v515_v31 = vadd.f32 %v514_v29, %v340_v22 }
  0xf0   : > { %1062 = vst [vmem:[%s1570_s29] sm:$0xff] %v1061_v30   ;;  %v1026_v32 = vpack.c.bf16 %v515_v31, %v513_v26 }
  0xf2   : > { %1078 = vst [vmem:[%s1574_s10 + $0x8] sm:$0xff] %v1026_v32  }
  0xf3   : > { %v570_v36 = vpop.f32.mrf.mxu2 }
  0xf4   : > { %v543_v37 = vpop.f32.mrf.mxu1  ;;  %v571_v44 = vadd.f32 %v570_v36, %v1561_v21 }
  0xf5   : > { %v544_v40 = vadd.f32 %v543_v37, %v1557_v14  ;;  %v517_v41 = vpop.f32.mrf.mxu3 }
  0xf6   : > { %v518_v45 = vadd.f32 %v517_v41, %v340_v22 }
  0xf7   : > { %v1046_v42 = vpack.c.bf16 %v544_v40, %v542_v39 }
  0xf9   : > { %1081 = vst [vmem:[%s1564_s24 + $0x8] sm:$0xff] %v1046_v42  }
  0xfb   : > { %v572_v43 = vpop.f32.mrf.mxu2 }
  0xfc   : > { %v573_v46 = vadd.f32 %v572_v43, %v1561_v21  ;;  %v546_v47 = vpop.f32.mrf.mxu1 }
  0xfd   : > { %v519_v48 = vpop.f32.mrf.mxu3  ;;  %v547_v54 = vadd.f32 %v546_v47, %v1557_v14 }
  0xfe   : > { %v1066_v49 = vpack.c.bf16 %v573_v46, %v571_v44  ;;  %v520_v50 = vadd.f32 %v519_v48, %v340_v22 }
 0x100   : > { %1084 = vst [vmem:[%s1570_s29 + $0x8] sm:$0xff] %v1066_v49   ;;  %v1031_v51 = vpack.c.bf16 %v520_v50, %v518_v45 }
 0x102   : > { %1079 = vst [vmem:[%s1574_s10 + $0x10] sm:$0xff] %v1031_v51  }
 0x103   : > { %v575_v52 = vpop.f32.mrf.mxu2 }
 0x104   : > { %v548_v53 = vpop.f32.mrf.mxu1  ;;  %v576_v59 = vadd.f32 %v575_v52, %v1561_v21 }
 0x105   : > { %v549_v55 = vadd.f32 %v548_v53, %v1557_v14  ;;  %v522_v56 = vpop.f32.mrf.mxu3 }
 0x106   : > { %v523_v60 = vadd.f32 %v522_v56, %v340_v22 }
 0x107   : > { %v1051_v57 = vpack.c.bf16 %v549_v55, %v547_v54 }
 0x109   : > { %1082 = vst [vmem:[%s1564_s24 + $0x10] sm:$0xff] %v1051_v57  }
 0x10b   : > { %v577_v58 = vpop.f32.mrf.mxu2 }
 0x10c   : > { %v578_v61 = vadd.f32 %v577_v58, %v1561_v21  ;;  %v551_v62 = vpop.f32.mrf.mxu1 }
 0x10d   : > { %v524_v63 = vpop.f32.mrf.mxu3 }
 0x10e   : > { %v1071_v0 = vpack.c.bf16 %v578_v61, %v576_v59  ;;  %v525_v1 = vadd.f32 %v524_v63, %v340_v22 }
 0x110   : > { %1085 = vst [vmem:[%s1570_s29 + $0x10] sm:$0xff] %v1071_v0   ;;  %v1036_v2 = vpack.c.bf16 %v525_v1, %v523_v60 }
 0x112   : > { %1080 = vst [vmem:[%s1574_s10 + $0x18] sm:$0xff] %v1036_v2  }
 0x113   : > { %v580_v3 = vpop.f32.mrf.mxu2 }
 0x114   : > { %1295 = shalt.err (!%p1292_p10)
}
 0x115   : > { %s1406_s30 = smov 64   ;;  %s1407_s10 = smov 4   ;;  %v553_v4 = vpop.f32.mrf.mxu1  ;;  %v552_v5 = vadd.f32 %v551_v62, %v1557_v14 }
 0x116   : > { %1105 = dma.vmem_to_hbm [thread:$0]  (%p1506_p3), %s1600_s7, 512, %s659_s8, %s634_s16, %s1406_s30, %s1406_s30, %s1407_s10   ;;  %v554_v6 = vadd.f32 %v553_v4, %v1557_v14 }
 0x117   : > { %s638_s1 = sand.u32 1, %s1459_s22   ;;  %s675_s2 = sshll.u32 %s672_s28, 4  ;;  %s676_s2 = int_to_ptr.hbm [resolvable:$true] %s675_s2 }
 0x118   : > { %v1056_v7 = vpack.c.bf16 %v554_v6, %v552_v5  ;;  %s689_s27 = scalar_lea.hbm %s1692_s5, %s1588_s11  ;;  %s1633_s9 = scalar_lea.sflag [#allocation10], %s638_s1 }
 0x119   : > { %s1310_s12 = sshra.s32 %s676_s2, 4  ;;  %s1316_s28 = scalar_lea.hbm %s1691_s4, 64  ;;  %s1311_s12 = int_to_ptr.hbm [resolvable:$true] %s1310_s12 }
 0x11a   : > { %1083 = vst [vmem:[%s1564_s24 + $0x18] sm:$0xff] %v1056_v7   ;;  %s1312_s7 = scalar_lea.hbm %s1311_s12, 32  ;;  %p1317_p5 = scmp.lt.s32.totalorder %s1311_s12, %s1691_s4 }
 0x11b   : > { %p1313_p12 = scmp.ne.s32.totalorder %s1311_s12, %s1312_s7  ;;  %p1318_p7 = scmp.lt.s32.totalorder %s1316_s28, %s1312_s7 }
 0x11d   : > { %p1314_p13 = pnand %p1313_p12, %p1506_p3  ;;  %p1319_p1 = por %p1318_p7, %p1317_p5 }
 0x11f   : > { %p1315_p0 = pneg %p1314_p13 }
 0x121   : > { %p1320_p4 = pnand %p1319_p1, %p1315_p0 }
 0x123   : > { %1323 = shalt.err (!%p1320_p4)
}
 0x124   : > { %1106 = dma.vmem_to_hbm [thread:$0]  (%p1506_p3), %s674_s15, 512, %s676_s2, %s1633_s9, %s1406_s30, %s1406_s30, %s1407_s10   ;;  %v582_v8 = vpop.f32.mrf.mxu2  ;;  %v581_v9 = vadd.f32 %v580_v3, %v1561_v21 }
 0x125   : > { %s690_s24 = sshll.u32 %s1570_s29, 4  ;;  %s692_s11 = sshll.u32 %s689_s27, 4  ;;  %v583_v10 = vadd.f32 %v582_v8, %v1561_v21  ;;  %s691_s24 = int_to_ptr.vmem [resolvable:$true] %s690_s24  ;;  %s693_s11 = int_to_ptr.hbm [resolvable:$true] %s692_s11 }
 0x126   : > { %s1338_s6 = sshra.s32 %s693_s11, 4  ;;  %s1344_s2 = scalar_lea.hbm %s1692_s5, 64  ;;  %s1339_s6 = int_to_ptr.hbm [resolvable:$true] %s1338_s6 }
 0x127   : > { %v1076_v11 = vpack.c.bf16 %v583_v10, %v581_v9  ;;  %s1340_s1 = scalar_lea.hbm %s1339_s6, 32  ;;  %p1345_p9 = scmp.lt.s32.totalorder %s1339_s6, %s1692_s5 }
 0x128   : > { %p1341_p8 = scmp.ne.s32.totalorder %s1339_s6, %s1340_s1  ;;  %p1346_p10 = scmp.lt.s32.totalorder %s1344_s2, %s1340_s1 }
 0x129   : > { %1086 = vst [vmem:[%s1570_s29 + $0x18] sm:$0xff] %v1076_v11  }
 0x12a   : > { %p1342_p11 = pnand %p1341_p8, %p1506_p3  ;;  %p1347_p12 = por %p1346_p10, %p1345_p9 }
 0x12c   : > { %p1343_p2 = pneg %p1342_p11 }
 0x12e   : > { %p1348_p13 = pnand %p1347_p12, %p1343_p2 }
 0x130   : > { %1351 = shalt.err (!%p1348_p13)
}
 0x131   : > { %1107 = dma.vmem_to_hbm [thread:$0]  (%p1506_p3), %s691_s24, 512, %s693_s11, %s1633_s9, %s1406_s30, %s1406_s30, %s1407_s10  }
 0x132 PF: > { %s707_s29 = sand.u32 1, %s1386_s18   ;;  %p1705_p0 = scmp.ge.s32.totalorder %s1398_s21, 2 }
 0x133   : > { %s708_s12 = scalar_lea.sflag [#allocation4], %s707_s29 }
 0x134   : > { %p1123_p5 = pnand %p1705_p0, %p1475_p6 }
 0x136   : > { %p1124_p7 = pneg %p1123_p5 }
 0x138   : > { %1377 = dma.done.wait (%p1124_p7), %s708_s12, 512  }
 0x139   : > { %1379 = vsyncadd (%p1124_p7), %s708_s12, 4294966784  ;;  %s1706_s7 = sadd.s32 4294967294, %s1398_s21  }
 0x13a   : > { %s717_s17 = sand.u32 1, %s1706_s7  }
 0x13b   : > { %s718_s22 = scalar_lea.sflag [#allocation10], %s717_s17 }
 0x13c   : > { %1381 = dma.done.wait (%p1124_p7), %s718_s22, 1024  }
 0x13d   : > { %1383 = vsyncadd (%p1124_p7), %s718_s22, 4294966272  ;;  %p23_p3 = scmp.ge.s32.totalorder %s1496_s14, 4   ;;  %s1707_s18 = smov %s1390_s19 }
 0x13e   : > { %s1708_s19 = smov %s1394_s20  ;;  %s1709_s20 = smov %s1512_s26 }
 0x13f   : > { %s1710_s21 = smov %s1496_s14  ;;  %25 = sbr.rel (!%p23_p3) target bundleno = 12 (0xc), region = 117 }
 0x144   :  { %734 = vsyncpa [#allocation3], 1 }
 0x145   :  { %736 = vsyncpa [#allocation3 + $0x1], 1 }
 0x146   :  { %737 = vsyncpa [#allocation6], 1 }
 0x147   :  { %738 = vsyncpa [#allocation4], 1 }
 0x148   :  { %740 = vsyncpa [#allocation4 + $0x1], 1 }
 0x149   :  { %741 = vsyncpa [#allocation10], 1 }
 0x14a   :  { %743 = vsyncpa [#allocation10 + $0x1], 1 }

</bundles_post_ra>
